<compile_context>
chip_gen: v7x
topology: tpu7x:2x2x1
jax: 0.10.0
libtpu: 0.0.40
codegen_flags: <defaults>
</compile_context>

<pallas_src>
import functools

import jax
import jax.numpy as jnp
import numpy as np
from jax.experimental import pallas as pl
from jax.experimental.pallas import tpu as pltpu


def nanosem_kernel(x_ref, wd_ref, wo_ref, bo_ref, out_ref):
    """One batch tile per grid step.

    x_ref : (BT*S, D)  flattened token embeddings for this batch tile
    wd_ref: (D, H)     down_project weight, pre-transposed  (H = 16)
    wo_ref: (H, O)     output head weight, pre-transposed   (O = 2)
    bo_ref: (1, O)     folded bias: bd @ Wo + bo
    out_ref: (BT, O)
    """
    BT, O = out_ref.shape
    BS, D = x_ref.shape
    S = BS // BT
    H = wd_ref.shape[1]

    # Single MXU matmul for every token in the tile.
    h = jnp.dot(x_ref[...], wd_ref[...], preferred_element_type=jnp.float32)  # (BT*S, H)

    # Max-pool over the sequence axis (sublane reduction on the XLU).
    pooled = jnp.max(h.reshape(BT, S, H), axis=1)                             # (BT, H)

    # Output head; down_project bias already folded into bo_ref.
    out_ref[...] = (
        jnp.dot(pooled, wo_ref[...], preferred_element_type=jnp.float32)
        + bo_ref[...]
    )


def _pick_b_tile(B):
    # Largest 8-multiple tile dividing B; fall back to whole-B for toy sizes.
    # (Sized conservatively vs. v7x's 64 MiB VMEM: double-buffered x block is
    #  2 * BT * S * D * 4 bytes, which at these tile caps stays in the KB range.)
    for cand in (512, 256, 128, 64, 32, 16, 8):
        if B % cand == 0:
            return cand
    return B


@functools.partial(jax.jit, static_argnames=())
def nanosem_forward(x, wd, bd, wo, bo):
    B, S, D = x.shape
    H = wd.shape[1]
    O = wo.shape[1]
    BT = _pick_b_tile(B)
    n_tiles = B // BT

    # Fold down_project bias into the output-head bias (exact: max is
    # shift-equivariant, so max_s(x@Wd + bd) = max_s(x@Wd) + bd).
    bo_fold = bd @ wo + bo                                   # (1, O)

    # Lane-dense 2-D view of x: (B*S, D).
    x2d = x.reshape(B * S, D)

    return pl.pallas_call(
        nanosem_kernel,
        out_shape=jax.ShapeDtypeStruct((B, O), jnp.float32),
        grid=(n_tiles,),
        in_specs=[
            pl.BlockSpec((BT * S, D), lambda i: (i, 0)),     # batch-tiled x
            pl.BlockSpec((D, H), lambda i: (0, 0)),          # resident weights
            pl.BlockSpec((H, O), lambda i: (0, 0)),
            pl.BlockSpec((1, O), lambda i: (0, 0)),
        ],
        out_specs=pl.BlockSpec((BT, O), lambda i: (i, 0)),
        compiler_params=pltpu.CompilerParams(
            dimension_semantics=("parallel",),               # v7x: 2 TCs split batch
        ),
    )(x2d, wd, wo, bo_fold)


def reference_forward(x, wd, bd, wo, bo):
    # Pure-JAX reference of the original module's math (unfolded biases).
    h = jnp.einsum("bsd,dh->bsh", x, wd) + bd[None, :, :]    # (B, S, H)
    pooled = jnp.max(h, axis=1)                              # (B, H)
    return pooled @ wo + bo                                  # (B, O)


if __name__ == "__main__":
    # Small shapes consistent with the module:
    #   word_model.dim = D = 32, down_project: Linear(32, 16),
    #   output_binary: Linear(16, 2).  batch=2, seq=8, vocab=64.
    B, S, D, H, O, V = 2, 8, 32, 16, 2, 64

    key = jax.random.PRNGKey(0)
    k_emb, k_ids, k_wd, k_bd, k_wo, k_bo = jax.random.split(key, 6)

    # "word_model": deterministic embedding table + token ids (glue, plain JAX).
    emb_table = jax.random.normal(k_emb, (V, D), dtype=jnp.float32)
    token_ids = jax.random.randint(k_ids, (B, S), 0, V)
    x = jnp.take(emb_table, token_ids, axis=0)               # (B, S, D) embeddings

    # Deterministic parameter init (PyTorch-Linear-style uniform(+-1/sqrt(fan_in))).
    wd = jax.random.uniform(k_wd, (D, H), jnp.float32, -1.0, 1.0) / np.sqrt(D)
    bd = jax.random.uniform(k_bd, (1, H), jnp.float32, -1.0, 1.0) / np.sqrt(D)
    wo = jax.random.uniform(k_wo, (H, O), jnp.float32, -1.0, 1.0) / np.sqrt(H)
    bo = jax.random.uniform(k_bo, (1, O), jnp.float32, -1.0, 1.0) / np.sqrt(H)

    out = nanosem_forward(x, wd, bd, wo, bo)
    out = jax.block_until_ready(out)

    ref = jax.block_until_ready(reference_forward(x, wd, bd, wo, bo))
    np.testing.assert_allclose(np.asarray(out), np.asarray(ref), rtol=1e-5, atol=1e-5)

    print("KERNEL_OK")
</pallas_src>

<mosaic_0001>
module attributes {stable_mosaic.version = 11 : i64} {
  func.func @nanosem_kernel(%arg0: i32, %arg1: memref<16x32xf32, #tpu.memory_space<vmem>>, %arg2: memref<32x16xf32, #tpu.memory_space<vmem>>, %arg3: memref<16x2xf32, #tpu.memory_space<vmem>>, %arg4: memref<1x2xf32, #tpu.memory_space<vmem>>, %arg5: memref<2x2xf32, #tpu.memory_space<vmem>>) attributes {dimension_semantics = [#tpu.dimension_semantics<parallel>], iteration_bounds = array<i64: 1>, scalar_prefetch = 0 : i64, scratch_operands = 0 : i64, tpu.core_type = #tpu.core_type<tc>, window_params = [{transform_indices = @transform_0, window_bounds = array<i64: 16, 32>}, {pipeline_mode = #tpu.pipeline_mode<synchronous>, transform_indices = @transform_1, window_bounds = array<i64: 32, 16>}, {pipeline_mode = #tpu.pipeline_mode<synchronous>, transform_indices = @transform_2, window_bounds = array<i64: 16, 2>}, {pipeline_mode = #tpu.pipeline_mode<synchronous>, transform_indices = @transform_3, window_bounds = array<i64: 1, 2>}, {transform_indices = @transform_4, window_bounds = array<i64: 2, 2>}]} {
    %c0 = arith.constant 0 : index
    %c0_0 = arith.constant 0 : index
    %0 = vector.load %arg1[%c0, %c0_0] : memref<16x32xf32, #tpu.memory_space<vmem>>, vector<16x32xf32>
    %c0_1 = arith.constant 0 : index
    %c0_2 = arith.constant 0 : index
    %1 = vector.load %arg2[%c0_1, %c0_2] : memref<32x16xf32, #tpu.memory_space<vmem>>, vector<32x16xf32>
    %cst = arith.constant dense<0.000000e+00> : vector<16x16xf32>
    %2 = tpu.matmul %0, %1, %cst {dimension_numbers = #tpu.dot_dimension_numbers<[1], [0], [0], [1], [0, 0, 1, 1], [], []>} : vector<16x32xf32>, vector<32x16xf32>, vector<16x16xf32> -> vector<16x16xf32>
    %3 = vector.shape_cast %2 : vector<16x16xf32> to vector<2x8x16xf32>
    %cst_3 = arith.constant dense<0xFF800000> : vector<2x16xf32>
    %4 = vector.multi_reduction <maximumf>, %3, %cst_3 [1] : vector<2x8x16xf32> to vector<2x16xf32>
    %c0_4 = arith.constant 0 : index
    %c0_5 = arith.constant 0 : index
    %5 = vector.load %arg3[%c0_4, %c0_5] : memref<16x2xf32, #tpu.memory_space<vmem>>, vector<16x2xf32>
    %cst_6 = arith.constant dense<0.000000e+00> : vector<2x2xf32>
    %6 = tpu.matmul %4, %5, %cst_6 {dimension_numbers = #tpu.dot_dimension_numbers<[1], [0], [0], [1], [0, 0, 1, 1], [], []>} : vector<2x16xf32>, vector<16x2xf32>, vector<2x2xf32> -> vector<2x2xf32>
    %c0_7 = arith.constant 0 : index
    %c0_8 = arith.constant 0 : index
    %7 = vector.load %arg4[%c0_7, %c0_8] : memref<1x2xf32, #tpu.memory_space<vmem>>, vector<1x2xf32>
    %8 = vector.broadcast %7 : vector<1x2xf32> to vector<2x2xf32>
    %9 = arith.addf %6, %8 : vector<2x2xf32>
    %c0_9 = arith.constant 0 : index
    %c0_10 = arith.constant 0 : index
    %10 = vector.load %arg5[%c0_9, %c0_10] : memref<2x2xf32, #tpu.memory_space<vmem>>, vector<2x2xf32>
    tpu.vector_store %arg5[%c0_9, %c0_10], %9 {strides = array<i32>} : memref<2x2xf32, #tpu.memory_space<vmem>>, vector<2x2xf32>,
    return
  }
  func.func @transform_0(%arg0: i32) -> (i32, i32) {
    %c0_i32 = arith.constant 0 : i32
    %c0_i32_0 = arith.constant 0 : i32
    return %arg0, %c0_i32 : i32, i32
  }
  func.func @transform_1(%arg0: i32) -> (i32, i32) {
    %c0_i32 = arith.constant 0 : i32
    %c0_i32_0 = arith.constant 0 : i32
    %c0_i32_1 = arith.constant 0 : i32
    return %c0_i32, %c0_i32_0 : i32, i32
  }
  func.func @transform_2(%arg0: i32) -> (i32, i32) {
    %c0_i32 = arith.constant 0 : i32
    %c0_i32_0 = arith.constant 0 : i32
    %c0_i32_1 = arith.constant 0 : i32
    return %c0_i32, %c0_i32_0 : i32, i32
  }
  func.func @transform_3(%arg0: i32) -> (i32, i32) {
    %c0_i32 = arith.constant 0 : i32
    %c0_i32_0 = arith.constant 0 : i32
    %c0_i32_1 = arith.constant 0 : i32
    return %c0_i32, %c0_i32_0 : i32, i32
  }
  func.func @transform_4(%arg0: i32) -> (i32, i32) {
    %c0_i32 = arith.constant 0 : i32
    %c0_i32_0 = arith.constant 0 : i32
    return %arg0, %c0_i32 : i32, i32
  }
}

</mosaic_0001>

<bundles_post_ra>
// kernel: nanosem_forward.1
= control target key start
LH: loop header
LB: loop body
LE: loop exit
PB: predicated region body
PF: predicated region fallthrough
CT: control target
= control target key end

     0   :  { %vm24_vm0 = vcmask 261120   ;;  %s363_s0 = inlined_call_operand.vmem [shape: f32[16,32], index: 0, kind: input, shape index: {}]   ;;  %s364_s1 = inlined_call_operand.vmem [shape: f32[32,16], index: 1, kind: input, shape index: {}]   ;;  %s365_s2 = inlined_call_operand.vmem [shape: f32[16,2], index: 2, kind: input, shape index: {}]   ;;  %s366_s3 = inlined_call_operand.vmem [shape: f32[1,2], index: 3, kind: input, shape index: {}]   ;;  %s367_s4 = inlined_call_operand.hbm [shape: f32[2,2], index: 4, kind: output, shape index: {}]  }
   0x1   :  { %v20_v0 = vld [vmem:[%s364_s1] sm:$0xff]  ;;  %v21_v1 = vld [vmem:[%s364_s1 + $0x8] sm:$0xff]  ;;  %v22_v2 = vld [vmem:[%s364_s1 + $0x10] sm:$0xff] }
   0x2   :  { %v253_v3 = vpack.c.bf16 %v21_v1, %v20_v0  ;;  %v23_v4 = vld [vmem:[%s364_s1 + $0x18] sm:$0xff]  ;;  %v18_v5 = vld [vmem:[%s363_s0] sm:$0xff] }
   0x3   :  { %v257_v6 = vpack.c.bf16 %v23_v4, %v22_v2  ;;  %243 = vmatprep.mubr.msk.f32.mxu0 %vm24_vm0, %v18_v5 }
   0x4   :  { %9 = vsyncpa [#allocation3], 0  ;;  %254 = vmatprep.subr.bf16.mxu0 %v253_v3  ;;  %v19_v7 = vld [vmem:[%s363_s0 + $0x8] sm:$0xff]  ;;  %v121_v8 = vld [vmem:[%s365_s2] sm:$0xff]  ;;  %v292_v11 = vmov 0.0|0.0   ;;  %vm293_vm1 = vmmov 0  }
   0x5   :  { %256 = vmatpush3.bf16.msra.mxu0 %v253_v3  ;;  %v122_v9 = vld [vmem:[%s365_s2 + $0x8] sm:$0xff]  ;;  %261 = vmatprep.subr.bf16.mxu1 %v292_v11  ;;  %v294_v12 = vmov 0.0   ;;  %vm106_vm2 = vcmask 130048   ;;  %vm132_vm3 = vcmask 1041409   ;;  %v224_v30 = vld [vmem:[%s366_s3] ss:$0 sm:$0xff] }
   0x6   :  { %258 = vmatprep.subr.bf16.mxu0 %v257_v6  ;;  %v262_v10 = vpack.c.bf16 %v122_v9, %v121_v8  ;;  %250 = vmatprep.mubr.msk.f32.mxu1 %vm293_vm1, %v294_v12  ;;  %s295_s30 = smov [#allocation2]   ;;  %vm206_vm4 = vcmask 9216  }
   0x7   :  { %s214_s5 = sshll.u32 %s295_s30, 4  ;;  %s215_s5 = int_to_ptr.vmem [resolvable:$true] %s214_s5 }
   0x8   :  { %263 = vmatpush3.bf16.msra.mxu1 %v262_v10  ;;  %s268_s6 = scalar_lea.vmem %s215_s5, 32  ;;  %p273_p1 = scmp.lt.s32.totalorder %s215_s5, %s215_s5 }
   0x9   :  { %260 = vmatpush3.bf16.msra.mxu0 %v257_v6  ;;  %p269_p0 = scmp.ne.s32.totalorder %s215_s5, %s268_s6  ;;  %p274_p2 = scmp.lt.s32.totalorder %s268_s6, %s268_s6 }
   0xb   :  { %p275_p3 = por %p274_p2, %p273_p1 }
   0xc   :  { %244 = vmatmul.mubr.msk.f32.vlgmr.msra.gmra.mrb[0].mxu0 %vm24_vm0, %v19_v7 }
   0xd   :  { %p276_p4 = pnand %p275_p3, %p269_p0 }
  0xdf   :  { %v245_v13 = vpop.f32.mrb[0].mxu0 }
  0xe0   :  { %v114_v14 = vsel %vm106_vm2, %v245_v13, -inf  ;;  %v97_v15 = vpop.f32.mrb[1].mxu0 }
  0xe1   :  { %v115_v16 = vrot.slane %v114_v14, 4  ;;  %v107_v17 = vsel %vm106_vm2, %v97_v15, -inf }
  0xe2   :  { %v108_v18 = vrot.slane %v107_v17, 4 }
  0xe3   :  { %v116_v19 = vmax.f32 %v114_v14, %v115_v16 }
  0xe4   :  { %v109_v20 = vmax.f32 %v107_v17, %v108_v18 }
  0xe5   :  { %v117_v21 = vrot.slane %v116_v19, 2 }
  0xe6   :  { %v110_v22 = vrot.slane %v109_v20, 2 }
  0xe7   :  { %v118_v23 = vmax.f32 %v116_v19, %v117_v21 }
  0xe8   :  { %v111_v24 = vmax.f32 %v109_v20, %v110_v22 }
  0xe9   :  { %v119_v25 = vrot.slane %v118_v23, 1 }
  0xea   :  { %v112_v26 = vrot.slane %v111_v24, 1 }
  0xeb   :  { %v120_v27 = vmax.f32 %v118_v23, %v119_v25 }
  0xec   :  { %v113_v28 = vmax.f32 %v111_v24, %v112_v26 }
  0xee   :  { %v133_v29 = vsel %vm132_vm3, %v120_v27, %v113_v28 }
  0xef   :  { %251 = vmatmul.mubr.msk.f32.vlgmr.msra.gmra.mrb[0].mxu1 %vm106_vm2, %v133_v29 }
 0x1c2   :  { %v202_v31 = vpop.f32.mrb[0].mxu1 }
 0x1c3   :  { %v203_v32 = vadd.f32 %v224_v30, %v202_v31  ;;  %v252_v33 = vpop.f32.mrb[1].mxu1 }
 0x1c5   :  { %207 = vst.msk [vmem:[#allocation2] sm:$0x3] %vm206_vm4, %v203_v32 }
 0x1c6   :  { %279 = shalt.err (!%p276_p4)
}
 0x1c7   :  { %s280_s9 = scalar_lea.hbm %s367_s4, 32 }
 0x1c8   :  { %p281_p5 = scmp.ne.s32.totalorder %s367_s4, %s280_s9  ;;  %p284_p6 = scmp.lt.u32.totalorder %s280_s9, %s367_s4 }
 0x1ca   :  { %p286_p7 = pnand %p284_p6, %p281_p5 }
 0x1cc   :  { %289 = shalt.err (!%p286_p7)
}
 0x1cd   :  { %217 = dma.vmem_to_hbm [thread:$0]  %s215_s5, 32, %s367_s4, [#allocation3]  }
 0x1ce   :  { %290 = dma.done.wait [#allocation3], 32  }
 0x1cf   :  { %291 = vsyncadd [#allocation3], 4294967264 }
 0x1d0   :  { %221 = vsyncpa [#allocation3], 1 }

</bundles_post_ra>
